<compile_context>
chip_gen: v5e
topology: v5e:2x2
jax: 0.10.0
libtpu: 0.0.40
codegen_flags: <defaults>
</compile_context>

<pallas_src>
import jax
import jax.numpy as jnp
from jax import lax
from jax.experimental import pallas as pl
from jax.experimental.pallas import tpu as pltpu


def _mlp_kernel(x_ref, w1_ref, wh_ref, bh_ref, wd_ref, bd_ref, out_ref):
    # x_ref: (TB, 13) batch-major tile read directly from the (B, 13) input.
    x = x_ref[...]

    # fc1 + relu1: contract the 13-dim of W1 (32,13) with the 13-dim of the
    # batch-major x tile -> feature-major (32, TB); no host/XLU transpose of x.
    h = lax.dot_general(w1_ref[...], x,
                        dimension_numbers=(((1,), (1,)), ((), ())),
                        preferred_element_type=jnp.float32)
    h = jnp.maximum(h + bh_ref[0], 0.0)

    # fc2 / fc21 / fc22 (+ReLU): (32,32) @ (32,TB) -> (32,TB).
    # Weights/biases are VMEM-resident across all grid steps.
    for l in range(3):
        h = jnp.dot(wh_ref[l], h, preferred_element_type=jnp.float32)
        h = jnp.maximum(h + bh_ref[l + 1], 0.0)

    # fc3 + 2-class softmax folded into one sigmoid row:
    #   d = (w3[1]-w3[0]) @ h + (b3[1]-b3[0]);  p0 = 1/(1+exp(d));  p1 = 1-p0
    d = jnp.dot(wd_ref[...], h, preferred_element_type=jnp.float32) + bd_ref[...]
    p0 = pl.reciprocal(1.0 + jnp.exp(d), approx=False)
    out_ref[0:1, :] = p0
    out_ref[1:2, :] = 1.0 - p0


def nn_small_forward_fm(x, params, *, block_b=4096):
    """Feature-major forward: x (B, 13) f32 -> (2, B) softmax probabilities.

    No host-side layout passes: the kernel reads batch-major input blocks and
    writes a lane-dense, feature-major output.
    """
    B, F = x.shape
    assert F == 13 and x.dtype == jnp.float32
    assert block_b % 512 == 0 and block_b >= 512

    if B <= 512:
        # Single full-array tile (block == array is always a legal BlockSpec).
        TB = B
    else:
        # Multiple of 512 (lane-full MXU pushes on v6e/v7x), capped at block_b,
        # and sized for >=2 grid steps so "parallel" can use both v7x TCs.
        TB = min(block_b, ((pl.cdiv(B, 2) + 511) // 512) * 512)
    n_tiles = pl.cdiv(B, TB)

    # Pack the 10 parameter operands into 5 (fewer DMA pipelines / buffers).
    w1 = params["w1"]                                               # (32, 13)
    wh = jnp.stack([params["w2"], params["w21"], params["w22"]])    # (3, 32, 32)
    bh = jnp.stack([params["b1"], params["b2"],
                    params["b21"], params["b22"]])                  # (4, 32, 1)
    wd = params["w3"][1:2] - params["w3"][0:1]                      # (1, 32)
    bd = params["b3"][1:2] - params["b3"][0:1]                      # (1, 1)

    in_specs = [
        pl.BlockSpec((TB, 13), lambda i: (i, 0)),        # x: tiled over batch
        pl.BlockSpec((32, 13), lambda i: (0, 0)),        # resident params
        pl.BlockSpec((3, 32, 32), lambda i: (0, 0, 0)),
        pl.BlockSpec((4, 32, 1), lambda i: (0, 0, 0)),
        pl.BlockSpec((1, 32), lambda i: (0, 0)),
        pl.BlockSpec((1, 1), lambda i: (0, 0)),
    ]

    return pl.pallas_call(
        _mlp_kernel,
        grid=(n_tiles,),
        in_specs=in_specs,
        out_specs=pl.BlockSpec((2, TB), lambda i: (0, i)),
        out_shape=jax.ShapeDtypeStruct((2, B), jnp.float32),
        compiler_params=pltpu.CompilerParams(
            dimension_semantics=("parallel",)),
    )(x, w1, wh, bh, wd, bd)


def nn_small_forward(x, params, *, block_b=4096):
    """PyTorch-semantics wrapper: x (B, 13) -> (B, 2) softmax probabilities."""
    # The only remaining host layout op is this small (2,B)->(B,2) transpose
    # (~16 B/elem); consumers that accept feature-major output should call
    # nn_small_forward_fm directly.
    return nn_small_forward_fm(x, params, block_b=block_b).T


def init_params(key):
    """Deterministic init mimicking PyTorch nn.Linear default U[-1/sqrt(fan_in), +].

    Weights stored in PyTorch layout (out, in); biases as (out, 1) columns so
    they broadcast over the lane (batch) axis inside the kernel.
    """
    dims = [("w1", "b1", 13, 32),
            ("w2", "b2", 32, 32),
            ("w21", "b21", 32, 32),
            ("w22", "b22", 32, 32),
            ("w3", "b3", 32, 2)]
    params = {}
    keys = jax.random.split(key, 2 * len(dims))
    for i, (wn, bn, fan_in, fan_out) in enumerate(dims):
        bound = 1.0 / jnp.sqrt(float(fan_in))
        params[wn] = jax.random.uniform(keys[2 * i], (fan_out, fan_in),
                                        minval=-bound, maxval=bound,
                                        dtype=jnp.float32)
        params[bn] = jax.random.uniform(keys[2 * i + 1], (fan_out, 1),
                                        minval=-bound, maxval=bound,
                                        dtype=jnp.float32)
    return params


def reference_forward(x, params):
    def lin(h, w, b):
        return h @ w.T + b[:, 0]
    h = jnp.maximum(lin(x, params["w1"], params["b1"]), 0.0)
    h = jnp.maximum(lin(h, params["w2"], params["b2"]), 0.0)
    h = jnp.maximum(lin(h, params["w21"], params["b21"]), 0.0)
    h = jnp.maximum(lin(h, params["w22"], params["b22"]), 0.0)
    logits = lin(h, params["w3"], params["b3"])
    return jax.nn.softmax(logits, axis=-1)


if __name__ == "__main__":
    key = jax.random.PRNGKey(0)
    k_params, k_x = jax.random.split(key)
    params = init_params(k_params)

    # Small batch: single full-array tile (TB = B = 8, grid=(1,)).
    B = 8
    x = jax.random.normal(k_x, (B, 13), dtype=jnp.float32)
    out = jax.block_until_ready(nn_small_forward(x, params))
    ref = reference_forward(x, params)
    assert out.shape == (B, 2), out.shape
    assert jnp.allclose(out, ref, atol=2e-5, rtol=2e-5)
    assert jnp.allclose(jnp.sum(out, axis=-1), 1.0, atol=1e-5)

    # Batch-grid path: B=1200 -> TB=1024, grid=(2,), partial last block.
    # Exercises masked edge reads/writes and the 2-tile "parallel" split.
    B2 = 1200
    x2 = jax.random.normal(jax.random.PRNGKey(1), (B2, 13), dtype=jnp.float32)
    out2 = jax.block_until_ready(nn_small_forward(x2, params))
    ref2 = reference_forward(x2, params)
    assert out2.shape == (B2, 2), out2.shape
    assert jnp.allclose(out2, ref2, atol=2e-5, rtol=2e-5)
    assert jnp.allclose(jnp.sum(out2, axis=-1), 1.0, atol=1e-5)

    print("KERNEL_OK")
</pallas_src>

<mosaic_0001>
module attributes {stable_mosaic.version = 11 : i64} {
  func.func @_mlp_kernel(%arg0: i32, %arg1: memref<8x13xf32, #tpu.memory_space<vmem>>, %arg2: memref<32x13xf32, #tpu.memory_space<vmem>>, %arg3: memref<3x32x32xf32, #tpu.memory_space<vmem>>, %arg4: memref<4x32x1xf32, #tpu.memory_space<vmem>>, %arg5: memref<1x32xf32, #tpu.memory_space<vmem>>, %arg6: memref<1x1xf32, #tpu.memory_space<vmem>>, %arg7: memref<2x8xf32, #tpu.memory_space<vmem>>) attributes {dimension_semantics = [#tpu.dimension_semantics<parallel>], iteration_bounds = array<i64: 1>, scalar_prefetch = 0 : i64, scratch_operands = 0 : i64, tpu.core_type = #tpu.core_type<tc>, window_params = [{transform_indices = @transform_0, window_bounds = array<i64: 8, 13>}, {pipeline_mode = #tpu.pipeline_mode<synchronous>, transform_indices = @transform_1, window_bounds = array<i64: 32, 13>}, {pipeline_mode = #tpu.pipeline_mode<synchronous>, transform_indices = @transform_2, window_bounds = array<i64: 3, 32, 32>}, {pipeline_mode = #tpu.pipeline_mode<synchronous>, transform_indices = @transform_3, window_bounds = array<i64: 4, 32, 1>}, {pipeline_mode = #tpu.pipeline_mode<synchronous>, transform_indices = @transform_4, window_bounds = array<i64: 1, 32>}, {pipeline_mode = #tpu.pipeline_mode<synchronous>, transform_indices = @transform_5, window_bounds = array<i64: 1, 1>}, {transform_indices = @transform_6, window_bounds = array<i64: 2, 8>}]} {
    %c0 = arith.constant 0 : index
    %c0_0 = arith.constant 0 : index
    %0 = vector.load %arg1[%c0, %c0_0] : memref<8x13xf32, #tpu.memory_space<vmem>>, vector<8x13xf32>
    %c0_1 = arith.constant 0 : index
    %c0_2 = arith.constant 0 : index
    %1 = vector.load %arg2[%c0_1, %c0_2] : memref<32x13xf32, #tpu.memory_space<vmem>>, vector<32x13xf32>
    %cst = arith.constant dense<0.000000e+00> : vector<32x8xf32>
    %2 = tpu.matmul %1, %0, %cst {dimension_numbers = #tpu.dot_dimension_numbers<[1], [1], [0], [0], [0, 0, 1, 0], [], []>} : vector<32x13xf32>, vector<8x13xf32>, vector<32x8xf32> -> vector<32x8xf32>
    %c0_3 = arith.constant 0 : index
    %c0_4 = arith.constant 0 : index
    %c0_5 = arith.constant 0 : index
    %3 = vector.load %arg4[%c0_3, %c0_4, %c0_5] : memref<4x32x1xf32, #tpu.memory_space<vmem>>, vector<1x32x1xf32>
    %4 = vector.shape_cast %3 : vector<1x32x1xf32> to vector<32x1xf32>
    %5 = vector.broadcast %4 : vector<32x1xf32> to vector<32x8xf32>
    %6 = arith.addf %2, %5 : vector<32x8xf32>
    %cst_6 = arith.constant 0.000000e+00 : f32
    %7 = vector.broadcast %cst_6 : f32 to vector<32x8xf32>
    %8 = arith.maximumf %6, %7 : vector<32x8xf32>
    %c0_7 = arith.constant 0 : index
    %c0_8 = arith.constant 0 : index
    %c0_9 = arith.constant 0 : index
    %9 = vector.load %arg3[%c0_7, %c0_8, %c0_9] : memref<3x32x32xf32, #tpu.memory_space<vmem>>, vector<1x32x32xf32>
    %10 = vector.shape_cast %9 : vector<1x32x32xf32> to vector<32x32xf32>
    %cst_10 = arith.constant dense<0.000000e+00> : vector<32x8xf32>
    %11 = tpu.matmul %10, %8, %cst_10 {dimension_numbers = #tpu.dot_dimension_numbers<[1], [0], [0], [1], [0, 0, 1, 1], [], []>} : vector<32x32xf32>, vector<32x8xf32>, vector<32x8xf32> -> vector<32x8xf32>
    %c1 = arith.constant 1 : index
    %c0_11 = arith.constant 0 : index
    %c0_12 = arith.constant 0 : index
    %12 = vector.load %arg4[%c1, %c0_11, %c0_12] : memref<4x32x1xf32, #tpu.memory_space<vmem>>, vector<1x32x1xf32>
    %13 = vector.shape_cast %12 : vector<1x32x1xf32> to vector<32x1xf32>
    %14 = vector.broadcast %13 : vector<32x1xf32> to vector<32x8xf32>
    %15 = arith.addf %11, %14 : vector<32x8xf32>
    %cst_13 = arith.constant 0.000000e+00 : f32
    %16 = vector.broadcast %cst_13 : f32 to vector<32x8xf32>
    %17 = arith.maximumf %15, %16 : vector<32x8xf32>
    %c1_14 = arith.constant 1 : index
    %c0_15 = arith.constant 0 : index
    %c0_16 = arith.constant 0 : index
    %18 = vector.load %arg3[%c1_14, %c0_15, %c0_16] : memref<3x32x32xf32, #tpu.memory_space<vmem>>, vector<1x32x32xf32>
    %19 = vector.shape_cast %18 : vector<1x32x32xf32> to vector<32x32xf32>
    %cst_17 = arith.constant dense<0.000000e+00> : vector<32x8xf32>
    %20 = tpu.matmul %19, %17, %cst_17 {dimension_numbers = #tpu.dot_dimension_numbers<[1], [0], [0], [1], [0, 0, 1, 1], [], []>} : vector<32x32xf32>, vector<32x8xf32>, vector<32x8xf32> -> vector<32x8xf32>
    %c2 = arith.constant 2 : index
    %c0_18 = arith.constant 0 : index
    %c0_19 = arith.constant 0 : index
    %21 = vector.load %arg4[%c2, %c0_18, %c0_19] : memref<4x32x1xf32, #tpu.memory_space<vmem>>, vector<1x32x1xf32>
    %22 = vector.shape_cast %21 : vector<1x32x1xf32> to vector<32x1xf32>
    %23 = vector.broadcast %22 : vector<32x1xf32> to vector<32x8xf32>
    %24 = arith.addf %20, %23 : vector<32x8xf32>
    %cst_20 = arith.constant 0.000000e+00 : f32
    %25 = vector.broadcast %cst_20 : f32 to vector<32x8xf32>
    %26 = arith.maximumf %24, %25 : vector<32x8xf32>
    %c2_21 = arith.constant 2 : index
    %c0_22 = arith.constant 0 : index
    %c0_23 = arith.constant 0 : index
    %27 = vector.load %arg3[%c2_21, %c0_22, %c0_23] : memref<3x32x32xf32, #tpu.memory_space<vmem>>, vector<1x32x32xf32>
    %28 = vector.shape_cast %27 : vector<1x32x32xf32> to vector<32x32xf32>
    %cst_24 = arith.constant dense<0.000000e+00> : vector<32x8xf32>
    %29 = tpu.matmul %28, %26, %cst_24 {dimension_numbers = #tpu.dot_dimension_numbers<[1], [0], [0], [1], [0, 0, 1, 1], [], []>} : vector<32x32xf32>, vector<32x8xf32>, vector<32x8xf32> -> vector<32x8xf32>
    %c3 = arith.constant 3 : index
    %c0_25 = arith.constant 0 : index
    %c0_26 = arith.constant 0 : index
    %30 = vector.load %arg4[%c3, %c0_25, %c0_26] : memref<4x32x1xf32, #tpu.memory_space<vmem>>, vector<1x32x1xf32>
    %31 = vector.shape_cast %30 : vector<1x32x1xf32> to vector<32x1xf32>
    %32 = vector.broadcast %31 : vector<32x1xf32> to vector<32x8xf32>
    %33 = arith.addf %29, %32 : vector<32x8xf32>
    %cst_27 = arith.constant 0.000000e+00 : f32
    %34 = vector.broadcast %cst_27 : f32 to vector<32x8xf32>
    %35 = arith.maximumf %33, %34 : vector<32x8xf32>
    %c0_28 = arith.constant 0 : index
    %c0_29 = arith.constant 0 : index
    %36 = vector.load %arg5[%c0_28, %c0_29] : memref<1x32xf32, #tpu.memory_space<vmem>>, vector<1x32xf32>
    %cst_30 = arith.constant dense<0.000000e+00> : vector<1x8xf32>
    %37 = tpu.matmul %36, %35, %cst_30 {dimension_numbers = #tpu.dot_dimension_numbers<[1], [0], [0], [1], [0, 0, 1, 1], [], []>} : vector<1x32xf32>, vector<32x8xf32>, vector<1x8xf32> -> vector<1x8xf32>
    %c0_31 = arith.constant 0 : index
    %c0_32 = arith.constant 0 : index
    %38 = vector.load %arg6[%c0_31, %c0_32] : memref<1x1xf32, #tpu.memory_space<vmem>>, vector<1x1xf32>
    %39 = vector.broadcast %38 : vector<1x1xf32> to vector<1x8xf32>
    %40 = arith.addf %37, %39 : vector<1x8xf32>
    %41 = math.exp %40 : vector<1x8xf32>
    %cst_33 = arith.constant 1.000000e+00 : f32
    %42 = vector.broadcast %cst_33 : f32 to vector<1x8xf32>
    %43 = arith.addf %42, %41 : vector<1x8xf32>
    %44 = tpu.reciprocal %43 : vector<1x8xf32> -> vector<1x8xf32>
    %c0_34 = arith.constant 0 : index
    %c0_35 = arith.constant 0 : index
    %45 = vector.load %arg7[%c0_34, %c0_35] : memref<2x8xf32, #tpu.memory_space<vmem>>, vector<1x8xf32>
    tpu.vector_store %arg7[%c0_34, %c0_35], %44 {strides = array<i32>} : memref<2x8xf32, #tpu.memory_space<vmem>>, vector<1x8xf32>,
    %cst_36 = arith.constant 1.000000e+00 : f32
    %46 = vector.broadcast %cst_36 : f32 to vector<1x8xf32>
    %47 = arith.subf %46, %44 : vector<1x8xf32>
    %c1_37 = arith.constant 1 : index
    %c0_38 = arith.constant 0 : index
    %48 = vector.load %arg7[%c1_37, %c0_38] : memref<2x8xf32, #tpu.memory_space<vmem>>, vector<1x8xf32>
    tpu.vector_store %arg7[%c1_37, %c0_38], %47 {strides = array<i32>} : memref<2x8xf32, #tpu.memory_space<vmem>>, vector<1x8xf32>,
    return
  }
  func.func @transform_0(%arg0: i32) -> (i32, i32) {
    %c0_i32 = arith.constant 0 : i32
    %c0_i32_0 = arith.constant 0 : i32
    return %arg0, %c0_i32 : i32, i32
  }
  func.func @transform_1(%arg0: i32) -> (i32, i32) {
    %c0_i32 = arith.constant 0 : i32
    %c0_i32_0 = arith.constant 0 : i32
    %c0_i32_1 = arith.constant 0 : i32
    return %c0_i32, %c0_i32_0 : i32, i32
  }
  func.func @transform_2(%arg0: i32) -> (i32, i32, i32) {
    %c0_i32 = arith.constant 0 : i32
    %c0_i32_0 = arith.constant 0 : i32
    %c0_i32_1 = arith.constant 0 : i32
    %c0_i32_2 = arith.constant 0 : i32
    return %c0_i32, %c0_i32_0, %c0_i32_1 : i32, i32, i32
  }
  func.func @transform_3(%arg0: i32) -> (i32, i32, i32) {
    %c0_i32 = arith.constant 0 : i32
    %c0_i32_0 = arith.constant 0 : i32
    %c0_i32_1 = arith.constant 0 : i32
    %c0_i32_2 = arith.constant 0 : i32
    return %c0_i32, %c0_i32_0, %c0_i32_1 : i32, i32, i32
  }
  func.func @transform_4(%arg0: i32) -> (i32, i32) {
    %c0_i32 = arith.constant 0 : i32
    %c0_i32_0 = arith.constant 0 : i32
    %c0_i32_1 = arith.constant 0 : i32
    return %c0_i32, %c0_i32_0 : i32, i32
  }
  func.func @transform_5(%arg0: i32) -> (i32, i32) {
    %c0_i32 = arith.constant 0 : i32
    %c0_i32_0 = arith.constant 0 : i32
    %c0_i32_1 = arith.constant 0 : i32
    return %c0_i32, %c0_i32_0 : i32, i32
  }
  func.func @transform_6(%arg0: i32) -> (i32, i32) {
    %c0_i32 = arith.constant 0 : i32
    %c0_i32_0 = arith.constant 0 : i32
    return %c0_i32, %arg0 : i32, i32
  }
}

</mosaic_0001>

<bundles_post_ra>
// kernel: tpu_custom_call.1
= control target key start
LH: loop header
LB: loop body
LE: loop exit
PB: predicated region body
PF: predicated region fallthrough
CT: control target
= control target key end

     0   :  { %s633_s0 = inlined_call_operand.vmem [shape: f32[8,13], index: 0, kind: input, shape index: {}]   ;;  %s634_s1 = inlined_call_operand.vmem [shape: f32[32,13], index: 1, kind: input, shape index: {}]   ;;  %s635_s2 = inlined_call_operand.vmem [shape: f32[3,32,32], index: 2, kind: input, shape index: {}]   ;;  %s636_s3 = inlined_call_operand.vmem [shape: f32[4,32,1], index: 3, kind: input, shape index: {}]   ;;  %s637_s4 = inlined_call_operand.vmem [shape: f32[1,32], index: 4, kind: input, shape index: {}]   ;;  %s638_s5 = inlined_call_operand.<no memory space> [shape: f32[1,1], index: 5, kind: input, shape index: {}]   ;;  %s639_s6 = inlined_call_operand.hbm [shape: f32[2,8], index: 6, kind: output, shape index: {}]  }
   0x1   :  { %v11_v0 = vstv %s638_s5 }
   0x2   :  { %12 = vst [vmem:[#allocation2] sm:$0x1] %v11_v0 }
   0x3   :  { %v26_v1 = vld [vmem:[%s633_s0] sm:$0xff]  ;;  %vm55_vm0 = vcmask 105472   ;;  %v34_v2 = vld [vmem:[%s636_s3 + $0x18] sm:$0xff]  ;;  %v32_v3 = vld [vmem:[%s636_s3 + $0x8] sm:$0xff]  ;;  %v470_v4 = vmov 0  }
   0x4   :  { %438 = vset.pattern.permute.xlu1 %v470_v4  ;;  %437 = vset.pattern.permute.xlu0 %v470_v4  ;;  %v27_v5 = vld [vmem:[%s634_s1] sm:$0xff] }
   0x5   :  { %397 = vmatpush.xpose.msk.msra.mxu0 %vm55_vm0, %v26_v1  ;;  %52 = vperm.xlu0 %437, %v34_v2  }
   0x6   :  { %42 = vperm.xlu1 %438, %v32_v3   ;;  %439 = vset.pattern.permute.xlu2 %v470_v4 }
   0x8   :  { %398 = vmatmul.msk.f32.vlgmr.msra.gmra.mxu0 %vm55_vm0, %v27_v5 }
   0x9   :  { %13 = vsyncpa [#allocation4], 0  ;;  %v33_v6 = vld [vmem:[%s636_s3 + $0x10] sm:$0xff]  ;;  %v31_v7 = vld [vmem:[%s636_s3] sm:$0xff]  ;;  %vm133_vm1 = vcmask 261120   ;;  %vm377_vm5 = vcmask 57344  }
   0xa   :  { %v28_v8 = vld [vmem:[%s634_s1 + $0x8] sm:$0xff]  ;;  %v402_v10 = vld [vmem:[%s636_s3 + $0x20] sm:$0xff]  ;;  %v29_v11 = vld [vmem:[%s634_s1 + $0x10] sm:$0xff]  ;;  %s388_s12 = sshll.u32 %s639_s6, 4  ;;  %s389_s12 = int_to_ptr.hbm [resolvable:$true] %s388_s12 }
   0xb   :  { %v403_v9 = vld [vmem:[%s636_s3 + $0x28] sm:$0xff]  ;;  %v416_v12 = vld [vmem:[%s636_s3 + $0x50] sm:$0xff]  ;;  %v30_v14 = vld [vmem:[%s634_s1 + $0x18] sm:$0xff] }
   0xc   :  { %v415_v13 = vld [vmem:[%s636_s3 + $0x48] sm:$0xff]  ;;  %v429_v15 = vld [vmem:[%s636_s3 + $0x78] sm:$0xff]  ;;  %v428_v16 = vld [vmem:[%s636_s3 + $0x70] sm:$0xff] }
   0xd   :  { %47 = vperm.xlu0 %437, %v33_v6   ;;  %v426_v17 = vld [vmem:[%s636_s3 + $0x60] sm:$0xff]  ;;  %v405_v24 = vld [vmem:[%s636_s3 + $0x38] sm:$0xff]  ;;  %v404_v32 = vld [vmem:[%s636_s3 + $0x30] sm:$0xff] }
   0xe   :  { %37 = vperm.xlu1 %438, %v31_v7   ;;  %v330_v18 = vld [vmem:[#allocation2] sm:$0x1]  ;;  %130 = vperm.xlu2 %439, %v405_v24   ;;  %v417_v38 = vld [vmem:[%s636_s3 + $0x58] sm:$0xff]  ;;  %v105_v39 = vld [vmem:[%s635_s2 + $0x8] sm:$0xff] }
   0xf   :  { %v104_v37 = vld [vmem:[%s635_s2] sm:$0xff]  ;;  %v106_v41 = vld [vmem:[%s635_s2 + $0x10] sm:$0xff]  ;;  %v427_v42 = vld [vmem:[%s636_s3 + $0x68] sm:$0xff] }
  0x10   :  { %399 = vmatmul.msk.f32.gmra.mxu0 %vm55_vm0, %v28_v8  ;;  %v414_v40 = vld [vmem:[%s636_s3 + $0x40] sm:$0xff]  ;;  %v107_v43 = vld [vmem:[%s635_s2 + $0x18] sm:$0xff]  ;;  %v411_v61 = vld [vmem:[%s635_s2 + $0x28] sm:$0xff] }
  0x11   :  { %v410_v60 = vld [vmem:[%s635_s2 + $0x20] sm:$0xff]  ;;  %v412_v62 = vld [vmem:[%s635_s2 + $0x30] sm:$0xff]  ;;  %v413_v63 = vld [vmem:[%s635_s2 + $0x38] sm:$0xff] }
  0x15   :  { %120 = vperm.xlu0 %437, %v403_v9  }
  0x16   :  { %115 = vperm.xlu1 %438, %v402_v10   ;;  %125 = vperm.xlu2 %439, %v404_v32  }
  0x18   :  { %400 = vmatmul.msk.f32.gmra.mxu0 %vm55_vm0, %v29_v11 }
  0x1d   :  { %201 = vperm.xlu0 %437, %v416_v12  }
  0x1e   :  { %196 = vperm.xlu1 %438, %v415_v13   ;;  %206 = vperm.xlu2 %439, %v417_v38  }
  0x20   :  { %401 = vmatmul.msk.f32.gmra.mxu0 %vm55_vm0, %v30_v14 }
  0x25   :  { %281 = vperm.xlu0 %437, %v429_v15  }
  0x26   :  { %276 = vperm.xlu1 %438, %v428_v16   ;;  %191 = vperm.xlu2 %439, %v414_v40   ;;  %v422_v16 = vld [vmem:[%s635_s2 + $0x40] sm:$0xff] }
  0x2d   :  { %266 = vperm.xlu0 %437, %v426_v17   ;;  %v423_v17 = vld [vmem:[%s635_s2 + $0x48] sm:$0xff] }
  0x2e   :  { %333 = vperm.xlu1 %438, %v330_v18   ;;  %271 = vperm.xlu2 %439, %v427_v42   ;;  %v424_v18 = vld [vmem:[%s635_s2 + $0x50] sm:$0xff] }
  0x68   :  { %v131_v46 = vpop.permute.xlu2 %130 }
  0x70   :  { %v126_v48 = vpop.permute.xlu2 %125 }
  0x77   :  { %v53_v21 = vpop.permute.xlu0 %52 }
  0x78   :  { %v43_v23 = vpop.permute.xlu1 %42  ;;  %v207_v3 = vpop.permute.xlu2 %206 }
  0x7f   :  { %v48_v25 = vpop.permute.xlu0 %47 }
  0x80   :  { %v38_v31 = vpop.permute.xlu1 %37  ;;  %v192_v11 = vpop.permute.xlu2 %191 }
  0x85   :  { %v88_v19 = vpop.f32.mrf.mxu0 }
  0x86   :  { %v89_v33 = vadd.f32 %v88_v19, %v38_v31  ;;  %v425_v19 = vld [vmem:[%s635_s2 + $0x58] sm:$0xff] }
  0x87   :  { %v121_v52 = vpop.permute.xlu0 %120 }
  0x88   :  { %v100_v36 = vmax.f32 %v89_v33, 0.0  ;;  %v116_v55 = vpop.permute.xlu1 %115 }
  0x8d   :  { %v91_v20 = vpop.f32.mrf.mxu0 }
  0x8e   :  { %v92_v29 = vadd.f32 %v91_v20, %v43_v23 }
  0x8f   :  { %v202_v4 = vpop.permute.xlu0 %201 }
  0x90   :  { %v101_v35 = vmax.f32 %v92_v29, 0.0  ;;  %v197_v8 = vpop.permute.xlu1 %196 }
  0x95   :  { %v94_v22 = vpop.f32.mrf.mxu0 }
  0x96   :  { %v95_v27 = vadd.f32 %v94_v22, %v48_v25 }
  0x97   :  { %v282_v23 = vpop.permute.xlu0 %281 }
  0x98   :  { %v102_v34 = vmax.f32 %v95_v27, 0.0  ;;  %v277_v24 = vpop.permute.xlu1 %276 }
  0x9d   :  { %v97_v26 = vpop.f32.mrf.mxu0 }
  0x9e   :  { %v98_v28 = vadd.f32 %v97_v26, %v53_v21 }
  0x9f   :  { %v267_v31 = vpop.permute.xlu0 %266 }
  0xa0   :  { %v103_v30 = vmax.f32 %v98_v28, 0.0  ;;  %v272_v28 = vpop.permute.xlu2 %271 }
  0xa2   :  { %158 = vmatpush.msra.mxu1 %v103_v30 }
  0xa4   :  { %159 = vmatpush.msra.mxu1 %v102_v34 }
  0xa6   :  { %160 = vmatpush.msra.mxu1 %v101_v35 }
  0xa8   :  { %161 = vmatpush.msra.mxu1 %v100_v36  ;;  %v329_v36 = vld [vmem:[%s637_s4] sm:$0x1]  ;;  %s471_s4 = smov [#allocation3]  }
  0xa9   :  { %406 = vmatmul.msk.f32.vlgmr.msra.gmra.mxu1 %vm133_vm1, %v104_v37  ;;  %v334_v37 = vpop.permute.xlu1 %333  ;;  %s386_s9 = sshll.u32 %s471_s4, 4  ;;  %s387_s9 = int_to_ptr.vmem [resolvable:$true] %s386_s9 }
  0xaa   :  { %v336_v38 = vperm.slane %v334_v37, 0 }
  0xb1   :  { %407 = vmatmul.msk.f32.gmra.mxu1 %vm133_vm1, %v105_v39 }
  0xb9   :  { %408 = vmatmul.msk.f32.gmra.mxu1 %vm133_vm1, %v106_v41 }
  0xc1   :  { %409 = vmatmul.msk.f32.gmra.mxu1 %vm133_vm1, %v107_v43 }
 0x126   :  { %v163_v44 = vpop.f32.mrf.mxu1 }
 0x127   :  { %v164_v56 = vadd.f32 %v163_v44, %v116_v55 }
 0x129   :  { %v175_v59 = vmax.f32 %v164_v56, 0.0 }
 0x12e   :  { %v166_v45 = vpop.f32.mrf.mxu1 }
 0x12f   :  { %v167_v53 = vadd.f32 %v166_v45, %v121_v52 }
 0x131   :  { %v176_v58 = vmax.f32 %v167_v53, 0.0 }
 0x136   :  { %v169_v47 = vpop.f32.mrf.mxu1 }
 0x137   :  { %v170_v50 = vadd.f32 %v169_v47, %v126_v48 }
 0x139   :  { %v177_v57 = vmax.f32 %v170_v50, 0.0 }
 0x13e   :  { %v172_v49 = vpop.f32.mrf.mxu1 }
 0x13f   :  { %v173_v51 = vadd.f32 %v172_v49, %v131_v46 }
 0x141   :  { %v178_v54 = vmax.f32 %v173_v51, 0.0 }
 0x143   :  { %233 = vmatpush.msra.mxu2 %v178_v54 }
 0x145   :  { %234 = vmatpush.msra.mxu2 %v177_v57 }
 0x147   :  { %235 = vmatpush.msra.mxu2 %v176_v58 }
 0x149   :  { %236 = vmatpush.msra.mxu2 %v175_v59 }
 0x14a   :  { %418 = vmatmul.msk.f32.vlgmr.msra.gmra.mxu2 %vm133_vm1, %v410_v60 }
 0x152   :  { %419 = vmatmul.msk.f32.gmra.mxu2 %vm133_vm1, %v411_v61 }
 0x15a   :  { %420 = vmatmul.msk.f32.gmra.mxu2 %vm133_vm1, %v412_v62 }
 0x162   :  { %421 = vmatmul.msk.f32.gmra.mxu2 %vm133_vm1, %v413_v63 }
 0x1cd   :  { %v238_v0 = vpop.f32.mrf.mxu2 }
 0x1ce   :  { %v239_v12 = vadd.f32 %v238_v0, %v192_v11 }
 0x1d0   :  { %v250_v15 = vmax.f32 %v239_v12, 0.0 }
 0x1d5   :  { %v241_v1 = vpop.f32.mrf.mxu2 }
 0x1d6   :  { %v242_v9 = vadd.f32 %v241_v1, %v197_v8 }
 0x1d8   :  { %v251_v14 = vmax.f32 %v242_v9, 0.0 }
 0x1dd   :  { %v244_v2 = vpop.f32.mrf.mxu2 }
 0x1de   :  { %v245_v6 = vadd.f32 %v244_v2, %v202_v4 }
 0x1e0   :  { %v252_v13 = vmax.f32 %v245_v6, 0.0 }
 0x1e5   :  { %v247_v5 = vpop.f32.mrf.mxu2 }
 0x1e6   :  { %v248_v7 = vadd.f32 %v247_v5, %v207_v3 }
 0x1e8   :  { %v253_v10 = vmax.f32 %v248_v7, 0.0 }
 0x1ea   :  { %308 = vmatpush.msra.mxu3 %v253_v10 }
 0x1ec   :  { %309 = vmatpush.msra.mxu3 %v252_v13 }
 0x1ee   :  { %310 = vmatpush.msra.mxu3 %v251_v14 }
 0x1f0   :  { %311 = vmatpush.msra.mxu3 %v250_v15 }
 0x1f1   :  { %430 = vmatmul.msk.f32.vlgmr.msra.gmra.mxu3 %vm133_vm1, %v422_v16 }
 0x1f9   :  { %431 = vmatmul.msk.f32.gmra.mxu3 %vm133_vm1, %v423_v17 }
 0x201   :  { %432 = vmatmul.msk.f32.gmra.mxu3 %vm133_vm1, %v424_v18 }
 0x209   :  { %433 = vmatmul.msk.f32.gmra.mxu3 %vm133_vm1, %v425_v19 }
 0x274   :  { %v313_v20 = vpop.f32.mrf.mxu3 }
 0x275   :  { %v314_v32 = vadd.f32 %v313_v20, %v267_v31 }
 0x277   :  { %v325_v35 = vmax.f32 %v314_v32, 0.0 }
 0x27c   :  { %v316_v21 = vpop.f32.mrf.mxu3 }
 0x27d   :  { %v317_v29 = vadd.f32 %v316_v21, %v272_v28 }
 0x27f   :  { %v326_v34 = vmax.f32 %v317_v29, 0.0 }
 0x284   :  { %v319_v22 = vpop.f32.mrf.mxu3 }
 0x285   :  { %v320_v26 = vadd.f32 %v319_v22, %v277_v24 }
 0x287   :  { %v327_v33 = vmax.f32 %v320_v26, 0.0 }
 0x28c   :  { %v322_v25 = vpop.f32.mrf.mxu3 }
 0x28d   :  { %v323_v27 = vadd.f32 %v322_v25, %v282_v23 }
 0x28f   :  { %v328_v30 = vmax.f32 %v323_v27, 0.0 }
 0x291   :  { %352 = vmatpush.msrb.mxu0 %v328_v30 }
 0x293   :  { %353 = vmatpush.msrb.mxu0 %v327_v33 }
 0x295   :  { %354 = vmatpush.msrb.mxu0 %v326_v34 }
 0x297   :  { %355 = vmatpush.msrb.mxu0 %v325_v35 }
 0x298   :  { %434 = vmatmul.msk.f32.vlgmr.msrb.gmra.mxu0 %vm133_vm1, %v329_v36 }
 0x315   :  { %v357_v39 = vpop.f32.mrf.mxu0 }
 0x316   :  { %v358_v40 = vadd.f32 %v357_v39, %v336_v38 }
 0x318   :  { %v360_v41 = vmul.f32 1.442695, %v358_v40 }
 0x31a   :  { %440 = vpow2.f32 %v360_v41 }
 0x320   :  { %v441_v42 = vpop.eup %440 }
 0x321   :  { %v362_v43 = vadd.f32 1.0, %v441_v42 }
 0x323   :  { %442 = vrcp.f32 %v362_v43  ;;  %v374_v47 = vand.u32 2147483648, %v362_v43  ;;  %v372_v49 = vand.u32 2147483647, %v362_v43  ;;  %vm368_vm3 = vweird.f32 %v362_v43 }
 0x325   :  { %v375_v51 = vor.u32 1.1754944e-38, %v374_v47  ;;  %vm373_vm6 = vcmp.eq.f32.partialorder %v372_v49, 8.507059e+37 }
 0x329   :  { %v443_v44 = vpop.eup %442 }
 0x32a   :  { %v364_v45 = vmul.f32 %v443_v44, %v362_v43  ;;  %vm369_vm2 = vweird.f32 %v443_v44 }
 0x32b   :  { %vm370_vm4 = vmor %vm368_vm3, %vm369_vm2 }
 0x32c   :  { %v365_v46 = vsub.f32 1.0, %v364_v45 }
 0x32e   :  { %v366_v48 = vmul.f32 %v443_v44, %v365_v46 }
 0x330   :  { %v367_v50 = vadd.f32 %v443_v44, %v366_v48 }
 0x332   :  { %v371_v52 = vsel %vm370_vm4, %v443_v44, %v367_v50 }
 0x333   :  { %v376_v53 = vsel %vm373_vm6, %v375_v51, %v371_v52 }
 0x334   :  { %378 = vst.msk [vmem:[#allocation3] sm:$0x1] %vm377_vm5, %v376_v53  ;;  %v379_v54 = vsub.f32 1.0, %v376_v53 }
 0x336   :  { %380 = vst.msk [vmem:[#allocation3 + $0x1] sm:$0x1] %vm377_vm5, %v379_v54 }
 0x337   :  { %391 = dma.vmem_to_hbm [thread:$0]  %s387_s9, 32, %s389_s12, [#allocation4]  }
 0x338   :  { %468 = dma.done.wait [#allocation4], 32  }
 0x339   :  { %469 = vsyncadd [#allocation4], 4294967264 }
 0x33a   :  { %396 = vsyncpa [#allocation4], 1 }

</bundles_post_ra>
